<compile_context>
chip_gen: v7x
topology: tpu7x:2x2x1
jax: 0.10.0
libtpu: 0.0.40
codegen_flags: <defaults>
</compile_context>

<pallas_src>
import jax
import jax.numpy as jnp
from jax import lax
from jax.experimental import pallas as pl
from jax.experimental.pallas import tpu as pltpu

_F32 = jnp.float32
_I32 = jnp.int32

_TILE_ROWS = 512  # rows of 128 lanes per grid step (~256 KiB per f32 plane)


def _round_up(x, m):
    return ((x + m - 1) // m) * m


# --------------------------------------------------------------------------- #
# Coarse node-correspondence precision (PIR) — gridless, small.
#   counts : SMEM (2,) int32 [M_pred, K_gt]
#   thr    : SMEM (1,) f32   [overlap threshold]
#   pred_keys : VMEM (Mp, 1) int32   packed predicted (ref, src) node pairs
#   gt_keys   : VMEM (1, Kp) int32   packed ground-truth node pairs
#   gt_ov     : VMEM (1, Kp) f32     ground-truth overlaps
#   out    : SMEM (1,) f32   PIR
# --------------------------------------------------------------------------- #
def _coarse_kernel(counts_ref, thr_ref, pred_keys_ref, gt_keys_ref, gt_ov_ref,
                   out_ref):
    m = counts_ref[0]
    k = counts_ref[1]
    thr = thr_ref[0]

    pred_k = pred_keys_ref[...]                         # (Mp, 1) int32
    gt_k = gt_keys_ref[...]                             # (1, Kp) int32
    gt_ov = gt_ov_ref[...]                              # (1, Kp) f32

    mp = pred_k.shape[0]
    kp = gt_k.shape[1]
    pred_valid = lax.broadcasted_iota(_I32, (mp, 1), 0) < m
    gt_valid = jnp.logical_and(gt_ov > thr,
                               lax.broadcasted_iota(_I32, (1, kp), 1) < k)

    match = jnp.logical_and(pred_k == gt_k, gt_valid)   # (Mp, Kp) bool
    hit = jnp.max(match.astype(_I32), axis=1, keepdims=True)   # int32 per row
    num = jnp.sum(jnp.where(pred_valid, hit, 0))                # int32
    out_ref[0] = num.astype(_F32) / jnp.maximum(m.astype(_F32), 1.0)


# --------------------------------------------------------------------------- #
# Fine inlier ratio (IR) — 1-D row grid, squared-distance compare (no sqrt).
#   counts  : SMEM (1,)  int32  [n_corr]
#   scalars : SMEM (13,) f32    [3x4 gt transform row-major, radius^2]
#   a/b     : VMEM blocks (3, TILE, 128) f32  ref / src corr-point planes
#   out     : SMEM (1,)  f32    IR
#   acc     : VMEM scratch (TILE, 128) f32    running inlier count
# --------------------------------------------------------------------------- #
def _fine_kernel(counts_ref, scal_ref, a_ref, b_ref, out_ref, acc_ref):
    t = pl.program_id(0)
    n = counts_ref[0]
    tile_rows = acc_ref.shape[0]
    base = t * (tile_rows * 128)

    @pl.when(t == 0)
    def _():
        acc_ref[...] = jnp.zeros_like(acc_ref)

    @pl.when(base < n)                    # skip fully-padded tail tiles
    def _():
        s = scal_ref
        bx = b_ref[0]
        by = b_ref[1]
        bz = b_ref[2]
        # R @ p + t, column-by-column with SMEM scalars (3x3 too small for MXU)
        tx = bx * s[0] + by * s[1] + bz * s[2] + s[3]
        ty = bx * s[4] + by * s[5] + bz * s[6] + s[7]
        tz = bx * s[8] + by * s[9] + bz * s[10] + s[11]
        dx = a_ref[0] - tx
        dy = a_ref[1] - ty
        dz = a_ref[2] - tz
        d2 = dx * dx + dy * dy + dz * dz            # squared distance only

        flat = (base
                + lax.broadcasted_iota(_I32, (tile_rows, 128), 0) * 128
                + lax.broadcasted_iota(_I32, (tile_rows, 128), 1))
        inlier = jnp.logical_and(flat < n, d2 < s[12])
        acc_ref[...] += inlier.astype(_F32)

    @pl.when(t == pl.num_programs(0) - 1)
    def _():
        out_ref[0] = jnp.sum(acc_ref[...]) / jnp.maximum(n.astype(_F32), 1.0)


# --------------------------------------------------------------------------- #
# Registration mean distance ("RMSE") — 1-D row grid, single point cloud.
#   counts  : SMEM (1,)  int32  [n_src]
#   scalars : SMEM (12,) f32    [3x4 realignment transform, row-major]
#   p       : VMEM blocks (3, TILE, 128) f32  src-point planes (used as both
#             source and target: dist = ||p - (R p + t)||)
#   out     : SMEM (1,)  f32    mean distance
#   acc     : VMEM scratch (TILE, 128) f32    running distance sum
# --------------------------------------------------------------------------- #
def _reg_kernel(counts_ref, scal_ref, p_ref, out_ref, acc_ref):
    t = pl.program_id(0)
    n = counts_ref[0]
    tile_rows = acc_ref.shape[0]
    base = t * (tile_rows * 128)

    @pl.when(t == 0)
    def _():
        acc_ref[...] = jnp.zeros_like(acc_ref)

    @pl.when(base < n)
    def _():
        s = scal_ref
        px = p_ref[0]
        py = p_ref[1]
        pz = p_ref[2]
        tx = px * s[0] + py * s[1] + pz * s[2] + s[3]
        ty = px * s[4] + py * s[5] + pz * s[6] + s[7]
        tz = px * s[8] + py * s[9] + pz * s[10] + s[11]
        dx = px - tx
        dy = py - ty
        dz = pz - tz
        dist = jnp.sqrt(dx * dx + dy * dy + dz * dz)

        flat = (base
                + lax.broadcasted_iota(_I32, (tile_rows, 128), 0) * 128
                + lax.broadcasted_iota(_I32, (tile_rows, 128), 1))
        acc_ref[...] += jnp.where(flat < n, dist, 0.0)

    @pl.when(t == pl.num_programs(0) - 1)
    def _():
        out_ref[0] = jnp.sum(acc_ref[...]) / jnp.maximum(n.astype(_F32), 1.0)


# --------------------------------------------------------------------------- #
# Host-side helpers.
# --------------------------------------------------------------------------- #
def _pack_planes(points, rows):
    """(N, 3) f32 -> lane-dense (3, rows, 128) coordinate planes, zero padded."""
    n = points.shape[0]
    p = jnp.transpose(points.astype(_F32))                  # (3, N)
    p = jnp.pad(p, ((0, 0), (0, rows * 128 - n)))
    return p.reshape(3, rows, 128)


def _plan_rows(n):
    """Bucketed (rows, tile_rows, num_tiles) for a stream of n points."""
    rows_raw = max((max(n, 1) + 127) // 128, 1)
    if rows_raw <= _TILE_ROWS:
        rows = max(8, int(pl.next_power_of_2(rows_raw)))    # pow2 bucket, >=8
        return rows, rows, 1
    rows = _round_up(rows_raw, _TILE_ROWS)
    return rows, _TILE_ROWS, rows // _TILE_ROWS


def coarse_precision(gt_node_corr_indices, gt_node_corr_overlaps,
                     ref_node_corr_indices, src_node_corr_indices,
                     n_ref_c, n_src_c, acceptance_overlap):
    # Packed (ref, src) -> single int32 key.
    assert n_ref_c * n_src_c < 2 ** 31, "packed int32 node key would overflow"
    K = gt_node_corr_indices.shape[0]
    M = ref_node_corr_indices.shape[0]
    Kp = _round_up(max(K, 1), 128)
    Mp = _round_up(max(M, 1), 8)

    gt_keys = (gt_node_corr_indices[:, 0].astype(_I32) * jnp.int32(n_src_c)
               + gt_node_corr_indices[:, 1].astype(_I32))
    gt_keys = jnp.pad(gt_keys, (0, Kp - K), constant_values=-1).reshape(1, Kp)
    gt_ov = jnp.pad(gt_node_corr_overlaps.astype(_F32),
                    (0, Kp - K)).reshape(1, Kp)
    pred_keys = (ref_node_corr_indices.astype(_I32) * jnp.int32(n_src_c)
                 + src_node_corr_indices.astype(_I32))
    pred_keys = jnp.pad(pred_keys, (0, Mp - M),
                        constant_values=-1).reshape(Mp, 1)

    counts = jnp.array([M, K], _I32)
    thr = jnp.array([acceptance_overlap], _F32)

    out = pl.pallas_call(
        _coarse_kernel,
        out_shape=jax.ShapeDtypeStruct((1,), _F32),
        in_specs=[pl.BlockSpec(memory_space=pltpu.MemorySpace.SMEM)] * 2
        + [pl.BlockSpec(memory_space=pltpu.MemorySpace.VMEM)] * 3,
        out_specs=pl.BlockSpec(memory_space=pltpu.MemorySpace.SMEM),
    )(counts, thr, pred_keys, gt_keys, gt_ov)
    return out[0]


def fine_inlier_ratio(ref_corr_points, src_corr_points, transform,
                      acceptance_radius):
    n = ref_corr_points.shape[0]
    rows, tile, num_tiles = _plan_rows(n)
    a = _pack_planes(ref_corr_points, rows)
    b = _pack_planes(src_corr_points, rows)
    counts = jnp.array([n], _I32)
    scalars = jnp.concatenate([
        transform[:3, :4].astype(_F32).reshape(-1),
        jnp.array([acceptance_radius * acceptance_radius], _F32),
    ])                                                       # (13,)

    out = pl.pallas_call(
        _fine_kernel,
        out_shape=jax.ShapeDtypeStruct((1,), _F32),
        grid=(num_tiles,),
        in_specs=[
            pl.BlockSpec(memory_space=pltpu.MemorySpace.SMEM),
            pl.BlockSpec(memory_space=pltpu.MemorySpace.SMEM),
            pl.BlockSpec((3, tile, 128), lambda t: (0, t, 0)),
            pl.BlockSpec((3, tile, 128), lambda t: (0, t, 0)),
        ],
        out_specs=pl.BlockSpec(memory_space=pltpu.MemorySpace.SMEM),
        scratch_shapes=[pltpu.VMEM((tile, 128), _F32)],
        compiler_params=pltpu.CompilerParams(
            dimension_semantics=("arbitrary",)),
    )(counts, scalars, a, b)
    return out[0]


def registration_mean_dist(src_points, realignment_transform):
    n = src_points.shape[0]
    rows, tile, num_tiles = _plan_rows(n)
    p = _pack_planes(src_points, rows)                       # passed ONCE
    counts = jnp.array([n], _I32)
    scalars = realignment_transform[:3, :4].astype(_F32).reshape(-1)   # (12,)

    out = pl.pallas_call(
        _reg_kernel,
        out_shape=jax.ShapeDtypeStruct((1,), _F32),
        grid=(num_tiles,),
        in_specs=[
            pl.BlockSpec(memory_space=pltpu.MemorySpace.SMEM),
            pl.BlockSpec(memory_space=pltpu.MemorySpace.SMEM),
            pl.BlockSpec((3, tile, 128), lambda t: (0, t, 0)),
        ],
        out_specs=pl.BlockSpec(memory_space=pltpu.MemorySpace.SMEM),
        scratch_shapes=[pltpu.VMEM((tile, 128), _F32)],
        compiler_params=pltpu.CompilerParams(
            dimension_semantics=("arbitrary",)),
    )(counts, scalars, p)
    return out[0]


# --------------------------------------------------------------------------- #
# Evaluator (JAX / Pallas version of the PyTorch module).
# --------------------------------------------------------------------------- #
class Evaluator:
    def __init__(self, acceptance_overlap, acceptance_radius, rmse_threshold):
        self.acceptance_overlap = acceptance_overlap
        self.acceptance_radius = acceptance_radius
        self.acceptance_rmse = rmse_threshold

    def __call__(self, output_dict, data_dict):
        transform = data_dict['transform'].astype(_F32)
        est_transform = output_dict['estimated_transform'].astype(_F32)

        # O(1) scalar glue on 4x4 matrices (isotropic_transform_error + inverse)
        # kept in plain JAX — not a kernel hot path.
        gt_rot, gt_tr = transform[:3, :3], transform[:3, 3]
        est_rot, est_tr = est_transform[:3, :3], est_transform[:3, 3]
        x = 0.5 * (jnp.trace(jnp.matmul(gt_rot.T, est_rot)) - 1.0)
        x = jnp.clip(x, -1.0, 1.0)
        rre = jnp.arccos(x) * (180.0 / jnp.pi)
        rte = jnp.linalg.norm(gt_tr - est_tr)
        realignment = jnp.matmul(jnp.linalg.inv(transform), est_transform)

        c_precision = coarse_precision(
            output_dict['gt_node_corr_indices'],
            output_dict['gt_node_corr_overlaps'],
            output_dict['ref_node_corr_indices'],
            output_dict['src_node_corr_indices'],
            output_dict['ref_points_c'].shape[0],
            output_dict['src_points_c'].shape[0],
            self.acceptance_overlap,
        )
        f_precision = fine_inlier_ratio(
            output_dict['ref_corr_points'],
            output_dict['src_corr_points'],
            transform,
            self.acceptance_radius,
        )
        # NOTE: "RMSE" here is the mean Euclidean distance (GeoTransformer
        # convention, matches the PyTorch reference), not a root-mean-square.
        rmse = registration_mean_dist(output_dict['src_points'], realignment)
        recall = (rmse < self.acceptance_rmse).astype(_F32)
        return {'PIR': c_precision, 'IR': f_precision, 'RRE': rre, 'RTE': rte,
                'RMSE': rmse, 'RR': recall}


# --------------------------------------------------------------------------- #
# Pure-JAX reference (mirrors the PyTorch code) used for a correctness check.
# --------------------------------------------------------------------------- #
def _apply_transform_ref(points, transform):
    rot = transform[:3, :3]
    tr = transform[:3, 3]
    return points @ rot.T + tr


def _reference(output_dict, data_dict, acceptance_overlap, acceptance_radius,
               acceptance_rmse):
    n_ref_c = output_dict['ref_points_c'].shape[0]
    n_src_c = output_dict['src_points_c'].shape[0]
    overlaps = output_dict['gt_node_corr_overlaps']
    idx = output_dict['gt_node_corr_indices']
    masks = overlaps > acceptance_overlap
    idx = idx[masks]
    gt_map = jnp.zeros((n_ref_c, n_src_c), _F32).at[idx[:, 0], idx[:, 1]].set(1.0)
    pir = gt_map[output_dict['ref_node_corr_indices'],
                 output_dict['src_node_corr_indices']].mean()

    transform = data_dict['transform']
    src_t = _apply_transform_ref(output_dict['src_corr_points'], transform)
    dists = jnp.linalg.norm(output_dict['ref_corr_points'] - src_t, axis=1)
    ir = (dists < acceptance_radius).astype(_F32).mean()

    est = output_dict['estimated_transform']
    x = 0.5 * (jnp.trace(transform[:3, :3].T @ est[:3, :3]) - 1.0)
    rre = jnp.arccos(jnp.clip(x, -1.0, 1.0)) * (180.0 / jnp.pi)
    rte = jnp.linalg.norm(transform[:3, 3] - est[:3, 3])
    realignment = jnp.linalg.inv(transform) @ est
    re_src = _apply_transform_ref(output_dict['src_points'], realignment)
    rmse = jnp.linalg.norm(re_src - output_dict['src_points'], axis=1).mean()
    rr = (rmse < acceptance_rmse).astype(_F32)
    return {'PIR': pir, 'IR': ir, 'RRE': rre, 'RTE': rte, 'RMSE': rmse, 'RR': rr}


# --------------------------------------------------------------------------- #
# Deterministic synthetic data + run.
# --------------------------------------------------------------------------- #
def _rigid_transform(angles, translation):
    ax, ay, az = angles
    ca, sa = jnp.cos(ax), jnp.sin(ax)
    cb, sb = jnp.cos(ay), jnp.sin(ay)
    cc, sc = jnp.cos(az), jnp.sin(az)
    rx = jnp.array([[1, 0, 0], [0, ca, -sa], [0, sa, ca]], _F32)
    ry = jnp.array([[cb, 0, sb], [0, 1, 0], [-sb, 0, cb]], _F32)
    rz = jnp.array([[cc, -sc, 0], [sc, cc, 0], [0, 0, 1]], _F32)
    rot = rz @ ry @ rx
    t = jnp.eye(4, dtype=_F32)
    t = t.at[:3, :3].set(rot)
    t = t.at[:3, 3].set(jnp.asarray(translation, _F32))
    return t


if __name__ == "__main__":
    key = jax.random.PRNGKey(0)
    keys = jax.random.split(key, 10)

    n_ref_c, n_src_c = 7, 9        # coarse node counts
    n_gt_corr, n_pred_corr = 12, 10
    n_corr_pts, n_src_pts = 24, 40  # distinct sizes: per-stream padding path

    transform = _rigid_transform((0.20, -0.10, 0.30), (0.50, -0.20, 0.10))
    est_transform = _rigid_transform((0.22, -0.08, 0.29), (0.53, -0.17, 0.12))

    src_corr_points = jax.random.normal(keys[0], (n_corr_pts, 3), _F32)
    noise = 0.05 * jax.random.normal(keys[1], (n_corr_pts, 3), _F32)
    ref_corr_points = _apply_transform_ref(src_corr_points, transform) + noise

    output_dict = {
        'ref_points_c': jax.random.normal(keys[2], (n_ref_c, 3), _F32),
        'src_points_c': jax.random.normal(keys[3], (n_src_c, 3), _F32),
        'gt_node_corr_indices': jnp.stack(
            [jax.random.randint(keys[4], (n_gt_corr,), 0, n_ref_c),
             jax.random.randint(keys[5], (n_gt_corr,), 0, n_src_c)], axis=1
        ).astype(_I32),
        'gt_node_corr_overlaps': jax.random.uniform(keys[6], (n_gt_corr,), _F32),
        'ref_node_corr_indices': jax.random.randint(
            keys[7], (n_pred_corr,), 0, n_ref_c).astype(_I32),
        'src_node_corr_indices': jax.random.randint(
            keys[8], (n_pred_corr,), 0, n_src_c).astype(_I32),
        'ref_corr_points': ref_corr_points,
        'src_corr_points': src_corr_points,
        'src_points': jax.random.normal(keys[9], (n_src_pts, 3), _F32),
        'estimated_transform': est_transform,
    }
    data_dict = {'transform': transform}

    evaluator = Evaluator(acceptance_overlap=0.1,
                          acceptance_radius=0.1,
                          rmse_threshold=0.2)

    result = evaluator(output_dict, data_dict)
    result = jax.block_until_ready(result)

    expected = _reference(output_dict, data_dict, 0.1, 0.1, 0.2)
    for k in ('PIR', 'IR', 'RRE', 'RTE', 'RMSE', 'RR'):
        got = float(result[k])
        want = float(expected[k])
        assert abs(got - want) <= 1e-4 + 1e-4 * abs(want), (k, got, want)

    print("KERNEL_OK")
</pallas_src>

<mosaic_0001>
module attributes {stable_mosaic.version = 11 : i64} {
  func.func @_coarse_kernel(%arg0: memref<2xi32, #tpu.memory_space<smem>>, %arg1: memref<1xf32, #tpu.memory_space<smem>>, %arg2: memref<16x1xi32, #tpu.memory_space<vmem>>, %arg3: memref<1x128xi32, #tpu.memory_space<vmem>>, %arg4: memref<1x128xf32, #tpu.memory_space<vmem>>, %arg5: memref<1xf32, #tpu.memory_space<smem>>) attributes {dimension_semantics = [], scalar_prefetch = 0 : i64, scratch_operands = 0 : i64, tpu.core_type = #tpu.core_type<tc>} {
    %c0 = arith.constant 0 : index
    %0 = memref.load %arg0[%c0] : memref<2xi32, #tpu.memory_space<smem>>
    %c1 = arith.constant 1 : index
    %1 = memref.load %arg0[%c1] : memref<2xi32, #tpu.memory_space<smem>>
    %c0_0 = arith.constant 0 : index
    %2 = memref.load %arg1[%c0_0] : memref<1xf32, #tpu.memory_space<smem>>
    %c0_1 = arith.constant 0 : index
    %c0_2 = arith.constant 0 : index
    %3 = vector.load %arg2[%c0_1, %c0_2] : memref<16x1xi32, #tpu.memory_space<vmem>>, vector<16x1xi32>
    %c0_3 = arith.constant 0 : index
    %c0_4 = arith.constant 0 : index
    %4 = vector.load %arg3[%c0_3, %c0_4] : memref<1x128xi32, #tpu.memory_space<vmem>>, vector<1x128xi32>
    %c0_5 = arith.constant 0 : index
    %c0_6 = arith.constant 0 : index
    %5 = vector.load %arg4[%c0_5, %c0_6] : memref<1x128xf32, #tpu.memory_space<vmem>>, vector<1x128xf32>
    %6 = tpu.iota {dimensions = array<i32: 0>} : vector<16x1xi32>
    %7 = vector.broadcast %0 : i32 to vector<16x1xi32>
    %8 = arith.cmpi slt, %6, %7 : vector<16x1xi32>
    %9 = vector.broadcast %2 : f32 to vector<1x128xf32>
    %10 = arith.cmpf ogt, %5, %9 : vector<1x128xf32>
    %11 = tpu.iota {dimensions = array<i32: 1>} : vector<1x128xi32>
    %12 = vector.broadcast %1 : i32 to vector<1x128xi32>
    %13 = arith.cmpi slt, %11, %12 : vector<1x128xi32>
    %14 = arith.andi %10, %13 : vector<1x128xi1>
    %15 = vector.broadcast %3 : vector<16x1xi32> to vector<16x128xi32>
    %16 = vector.broadcast %4 : vector<1x128xi32> to vector<16x128xi32>
    %17 = arith.cmpi eq, %15, %16 : vector<16x128xi32>
    %18 = vector.broadcast %14 : vector<1x128xi1> to vector<16x128xi1>
    %19 = arith.andi %17, %18 : vector<16x128xi1>
    %20 = arith.extui %19 : vector<16x128xi1> to vector<16x128xi32>
    %cst = arith.constant dense<-2147483648> : vector<16xi32>
    %21 = vector.multi_reduction <maxsi>, %20, %cst [1] : vector<16x128xi32> to vector<16xi32>
    %22 = vector.shape_cast %21 : vector<16xi32> to vector<16x1xi32>
    %c0_i32 = arith.constant 0 : i32
    %23 = vector.broadcast %c0_i32 : i32 to vector<16x1xi32>
    %24 = arith.select %8, %22, %23 : vector<16x1xi1>, vector<16x1xi32>
    %25 = vector.shape_cast %24 : vector<16x1xi32> to vector<1x16x1xi32>
    %cst_7 = arith.constant dense<0> : vector<1xi32>
    %26 = vector.multi_reduction <add>, %25, %cst_7 [1, 2] : vector<1x16x1xi32> to vector<1xi32>
    %27 = vector.shape_cast %26 : vector<1xi32> to vector<1x1x1xi32>
    %28 = vector.extract %27[0, 0, 0] : i32 from vector<1x1x1xi32>
    %29 = arith.sitofp %28 : i32 to f32
    %30 = arith.sitofp %0 : i32 to f32
    %cst_8 = arith.constant 1.000000e+00 : f32
    %31 = arith.maximumf %30, %cst_8 : f32
    %32 = arith.divf %29, %31 : f32
    %c0_9 = arith.constant 0 : index
    %33 = memref.load %arg5[%c0_9] : memref<1xf32, #tpu.memory_space<smem>>
    memref.store %32, %arg5[%c0_9] : memref<1xf32, #tpu.memory_space<smem>>
    return
  }
}

</mosaic_0001>

<bundles_post_ra>
// kernel: tpu_custom_call.1
= control target key start
LH: loop header
LB: loop body
LE: loop exit
PB: predicated region body
PF: predicated region fallthrough
CT: control target
= control target key end

     0   :  { %11 = vsyncpa [#allocation5], 0  ;;  %s241_s0 = inlined_call_operand.vmem [shape: s32[2], index: 0, kind: input, shape index: {}]   ;;  %s242_s1 = inlined_call_operand.<no memory space> [shape: f32[1], index: 1, kind: input, shape index: {}]   ;;  %s243_s2 = inlined_call_operand.vmem [shape: s32[16,1], index: 2, kind: input, shape index: {}]   ;;  %s244_s3 = inlined_call_operand.vmem [shape: s32[1,128], index: 3, kind: input, shape index: {}]   ;;  %s245_s4 = inlined_call_operand.vmem [shape: f32[1,128], index: 4, kind: input, shape index: {}]   ;;  %s246_s5 = inlined_call_operand.hbm [shape: f32[1], index: 5, kind: output, shape index: {}]  }
   0x1   :  { %12 = vsyncpa [#allocation4], 0  ;;  %s19_s20 = sshll.u32 %s241_s0, 4  ;;  %s20_s20 = int_to_ptr.vmem [resolvable:$true] %s19_s20 }
   0x2   :  { %s151_s21 = scalar_lea.vmem %s20_s20, 16  ;;  %p156_p1 = scmp.lt.s32.totalorder %s20_s20, %s20_s20 }
   0x3   :  { %p152_p0 = scmp.ne.s32.totalorder %s20_s20, %s151_s21  ;;  %p157_p2 = scmp.lt.s32.totalorder %s151_s21, %s151_s21 }
   0x5   :  { %p158_p3 = por %p157_p2, %p156_p1 }
   0x7   :  { %p159_p4 = pnand %p158_p3, %p152_p0 }
   0x9   :  { %162 = shalt.err (!%p159_p4)
}
   0xa   :  { %s177_s22 = smov [#allocation3]  }
   0xb   :  { %22 = dma.vmem_to_smem %s20_s20, 16, %s177_s22, [#allocation5]  }
   0xc   :  { %173 = dma.done.wait [#allocation5], 16  }
   0xd   :  { %174 = vsyncadd [#allocation5], 4294967280 }
   0xe   :  { %34 = sfence }
   0xf   :  { %v38_v0 = vld [vmem:[%s243_s2] sm:$0xff]  ;;  %v178_v1 = vmov 0   ;;  %v39_v2 = vld [vmem:[%s243_s2 + $0x8] sm:$0xff]  ;;  %s138_s26 = sld [smem:[#allocation3 + $0x1]]  ;;  %v42_v3 = vlaneseq  ;;  %v48_v6 = vstv %s242_s1  ;;  %s35_s1 = sld [smem:[#allocation3]] }
  0x10   :  { %148 = vset.pattern.permute.xlu0 %v178_v1  ;;  %v41_v5 = vld [vmem:[%s245_s4] sm:$0x1]  ;;  %s179_s4 = smov 1.0   ;;  %s163_s14 = scalar_lea.hbm %s246_s5, 16 }
  0x11   :  { %56 = vperm.xlu0 %148, %v38_v0   ;;  %v51_v4 = vand.u32 127, %v42_v3  ;;  %vm49_vm0 = vcmp.gt.f32.partialorder %v41_v5, %v48_v6  ;;  %v43_v8 = vshrl.u32 %v42_v3, 7  ;;  %v139_v12 = vld [vmem:[%s244_s3] ss:$0 sm:$0xff]  ;;  %p164_p5 = scmp.ne.s32.totalorder %s246_s5, %s163_s14  ;;  %p167_p6 = scmp.lt.u32.totalorder %s163_s14, %s246_s5 }
  0x13   :  { %v70_v9 = vsub.s32 0, %v43_v8  ;;  %v44_v33 = vadd.s32 8, %v43_v8  ;;  %p169_p7 = pnand %p167_p6, %p164_p5 }
  0x15   :  { %59 = vperm.xlu0 %148, %v39_v2   ;;  %v52_v7 = vstv %s138_s26  ;;  %s116_s3 = scvt.s32.f32 %s35_s1  ;;  %v45_v35 = vstv %s35_s1 }
  0x16   :  { %vm53_vm1 = vcmp.lt.s32.totalorder %v51_v4, %v52_v7  ;;  %vm46_vm10 = vcmp.lt.s32.totalorder %v43_v8, %v45_v35  ;;  %vm47_vm11 = vcmp.lt.s32.totalorder %v44_v33, %v45_v35 }
  0x17   :  { %vm54_vm2 = vmand %vm49_vm0, %vm53_vm1  ;;  %s117_s7 = smax.f32 %s179_s4, %s116_s3 }
  0x18   :  { %v67_v10 = vsel %vm54_vm2, 1, %v178_v1  ;;  %v118_v43 = vstv %s117_s7 }
  0x19   :  { %v71_v11 = vrot.slane %v67_v10, %v70_v9  ;;  %149 = vrcp.f32 %v118_v43 }
  0x1b   :  { %vm72_vm3 = vcmp.eq.s32.totalorder %v71_v11, 1 }
  0x23   :  { %v150_v50 = vpop.eup %149 }
  0x90   :  { %v57_v13 = vpop.permute.xlu0 %56 }
  0x91   :  { %vm65_vm4 = vcmp.eq.s32.totalorder %v57_v13, %v139_v12 }
  0x92   :  { %vm73_vm5 = vmand %vm65_vm4, %vm72_vm3 }
  0x93   :  { %v75_v14 = vsel %vm73_vm5, 1, %v178_v1 }
  0x94   :  { %v60_v15 = vpop.permute.xlu0 %59  ;;  %v78_v16 = vshra.s32 %v75_v14, 16  ;;  %v77_v21 = vand.u32 65535, %v75_v14 }
  0x95   :  { %vm66_vm6 = vcmp.eq.s32.totalorder %v60_v15, %v139_v12 }
  0x96   :  { %vm74_vm7 = vmand %vm66_vm6, %vm72_vm3  ;;  %v80_v17 = vcvt.s32.f32 %v78_v16  ;;  %v79_v23 = vcvt.s32.f32 %v77_v21 }
  0x97   :  { %v76_v18 = vsel %vm74_vm7, 1, %v178_v1 }
  0x98   :  { %81 = vmax.xlane.f32.xlu1 %v80_v17  ;;  %v92_v19 = vshra.s32 %v76_v18, 16  ;;  %v91_v24 = vand.u32 65535, %v76_v18 }
  0x9a   :  { %v94_v20 = vcvt.s32.f32 %v92_v19  ;;  %v93_v27 = vcvt.s32.f32 %v91_v24 }
  0x9c   :  { %95 = vmax.xlane.f32.xlu1 %v94_v20 }
 0x125   :  { %v82_v22 = vpop.xlane.xlu1 %81 }
 0x126   :  { %vm83_vm8 = vcmp.eq.f32.partialorder %v80_v17, %v82_v22  ;;  %v88_v29 = vcvt.f32.s32 %v82_v22 }
 0x127   :  { %v84_v25 = vsel %vm83_vm8, %v79_v23, -inf }
 0x128   :  { %85 = vmax.xlane.f32.xlu0 %v84_v25  ;;  %v89_v34 = vshll.u32 %v88_v29, 16 }
 0x129   :  { %v96_v26 = vpop.xlane.xlu1 %95 }
 0x12a   :  { %vm97_vm9 = vcmp.eq.f32.partialorder %v94_v20, %v96_v26  ;;  %v102_v31 = vcvt.f32.s32 %v96_v26 }
 0x12b   :  { %v98_v28 = vsel %vm97_vm9, %v93_v27, -inf }
 0x12c   :  { %99 = vmax.xlane.f32.xlu1 %v98_v28  ;;  %v103_v37 = vshll.u32 %v102_v31, 16 }
 0x1b5   :  { %v86_v30 = vpop.xlane.xlu0 %85 }
 0x1b6   :  { %v87_v32 = vcvt.f32.s32 %v86_v30 }
 0x1b8   :  { %v90_v38 = vadd.s32 %v89_v34, %v87_v32 }
 0x1b9   :  { %v100_v36 = vpop.xlane.xlu1 %99 }
 0x1ba   :  { %v101_v39 = vcvt.f32.s32 %v100_v36  ;;  %v105_v41 = vsel %vm46_vm10, %v90_v38, 0 }
 0x1bc   :  { %v104_v40 = vadd.s32 %v103_v37, %v101_v39 }
 0x1be   :  { %v106_v42 = vsel %vm47_vm11, %v104_v40, 0 }
 0x1bf   :  { %v107_v44 = vadd.s32 %v106_v42, %v105_v41 }
 0x1c1   :  { %v108_v45 = vrot.slane %v107_v44, 4 }
 0x1c3   :  { %v109_v46 = vadd.s32 %v108_v45, %v107_v44 }
 0x1c5   :  { %v110_v47 = vrot.slane %v109_v46, 2 }
 0x1c7   :  { %v111_v48 = vadd.s32 %v110_v47, %v109_v46 }
 0x1c9   :  { %v112_v49 = vrot.slane %v111_v48, 1 }
 0x1cb   :  { %v113_v51 = vadd.s32 %v112_v49, %v111_v48 }
 0x1cd   :  { %140 = vpush %v113_v51 }
 0x1ce   :  { %142 = vpush %v150_v50 }
 0x1fe   :  { %s141_s8 = spop %140 }
 0x1ff   :  { %s115_s9 = scvt.s32.f32 %s141_s8  ;;  %s143_s10 = spop %142 }
 0x201   :  { %s121_s11 = smul.f32 %s143_s10, %s115_s9 }
 0x203   :  { %123 = sst [smem:[#allocation6]] %s121_s11 }
 0x204   :  { %172 = shalt.err (!%p169_p7)
}
 0x205   :  { %s180_s19 = smov [#allocation6]  }
 0x206   :  { %131 = dma.smem_to_hbm %s180_s19, 16, %s246_s5, [#allocation4]  }
 0x207   :  { %175 = dma.done.wait [#allocation4], 16  }
 0x208   :  { %176 = vsyncadd [#allocation4], 4294967280 }
 0x209   :  { %135 = sfence }
 0x20a   :  { %136 = vsyncpa [#allocation4], 1 }
 0x20b   :  { %137 = vsyncpa [#allocation5], 1 }

</bundles_post_ra>
